<compile_context>
chip_gen: v5e
topology: v5e:2x2
jax: 0.10.0
libtpu: 0.0.40
codegen_flags: <defaults>
</compile_context>

<pallas_src>
import functools

import jax
import jax.numpy as jnp
from jax.experimental import pallas as pl
from jax.experimental.pallas import tpu as pltpu


def _decoder_step_kernel(n_layers, hidden_size,
                         emb_ref, tilde_ref, h0_ref, c0_ref,
                         w_ih0_ref, w_ih_ref, w_hh_ref, b_ref, out_ref):
    """Fused single-timestep multi-layer LSTM, fully resident in VMEM.

    Inputs:
      emb_ref   (B, W)        f32   embedding at timestep t
      tilde_ref (B, H)        f32   h_t_1_tilde (zeros if None)
      h0_ref    (L, B, H)     f32   previous hidden states
      c0_ref    (L, B, H)     f32   previous cell states
      w_ih0_ref (W+H, 4H)     bf16  layer-0 input weights (W_ih^T), gate order (i,f,g,o)
      w_ih_ref  (L-1, H, 4H)  bf16  layers 1..L-1 input weights (W_ih^T)
      w_hh_ref  (L, H, 4H)    bf16  recurrent weights (W_hh^T)
      b_ref     (L, 1, 4H)    f32   fused biases (b_ih + b_hh)
    Output:
      out_ref   (B, 2*L*H)    f32   packed [h_0 .. h_{L-1} | c_0 .. c_{L-1}]
    """
    L, H = n_layers, hidden_size

    # --- Hoisted off the critical path: recurrent contribution of every layer.
    # recur[l] = h0[l] @ W_hh[l]^T + (b_ih + b_hh); depends only on inputs, so these
    # 4 matmuls issue back-to-back on the MXU before the serial layer chain starts.
    recur = []
    for l in range(L):
        r = jnp.dot(h0_ref[l].astype(jnp.bfloat16), w_hh_ref[l],
                    preferred_element_type=jnp.float32) + b_ref[l]       # (B, 4H)
        recur.append(r)

    # In-kernel concat([emb_t, h_t_1_tilde], dim=-1) -> layer-0 input. Also only
    # depends on inputs, so it overlaps with the recurrent matmuls above.
    layer_in = jnp.concatenate(
        [emb_ref[...], tilde_ref[...]], axis=-1).astype(jnp.bfloat16)    # (B, W+H)

    h_outs = []
    c_outs = []
    for l in range(L):
        w_in = w_ih0_ref[...] if l == 0 else w_ih_ref[l - 1]
        gates = jnp.dot(layer_in, w_in,
                        preferred_element_type=jnp.float32) + recur[l]   # (B, 4H) f32

        # Two full-width EUP passes over the whole (B, 4H) vector; gates are cheap
        # slices of the already-computed results (i, f, o from sigmoid; g from tanh).
        sig = jax.nn.sigmoid(gates)
        tnh = jnp.tanh(gates)
        i_g = sig[:, 0 * H:1 * H]
        f_g = sig[:, 1 * H:2 * H]
        g_g = tnh[:, 2 * H:3 * H]
        o_g = sig[:, 3 * H:4 * H]

        c_prev = c0_ref[l].astype(jnp.float32)
        c_new = f_g * c_prev + i_g * g_g
        h_new = o_g * jnp.tanh(c_new)

        h_outs.append(h_new)
        c_outs.append(c_new)

        # TODO(synk): inter-layer dropout (p=0.2) is training-only; eval forward is a no-op.
        layer_in = h_new.astype(jnp.bfloat16)

    # Single dense, lane-aligned (B, 2*L*H) epilogue store (one unmasked writeback
    # instead of 2*L masked 32-lane stores on the per-layer critical path).
    out_ref[...] = jnp.concatenate(h_outs + c_outs, axis=-1).astype(out_ref.dtype)


def init_decoder_params(key, word_vec_dim, hidden_size, n_layers):
    """Deterministic LSTM params (PyTorch layout), pre-packed for the kernel.

      w_ih0: (W+H, 4H)      bf16   layer-0 W_ih^T
      w_ih:  (L-1, H, 4H)   bf16   layers 1..L-1 W_ih^T
      w_hh:  (L, H, 4H)     bf16   W_hh^T for all layers
      b:     (L, 1, 4H)     f32    b_ih + b_hh
    """
    W, H, L = word_vec_dim, hidden_size, n_layers
    w_ih_list, w_hh_list, b_list = [], [], []
    for layer in range(L):
        in_dim = W + H if layer == 0 else H
        key, k1, k2, k3, k4 = jax.random.split(key, 5)
        scale = 1.0 / jnp.sqrt(H)
        w_ih = jax.random.uniform(k1, (4 * H, in_dim),
                                  minval=-scale, maxval=scale, dtype=jnp.float32)
        w_hh = jax.random.uniform(k2, (4 * H, H),
                                  minval=-scale, maxval=scale, dtype=jnp.float32)
        b_ih = jax.random.uniform(k3, (4 * H,),
                                  minval=-scale, maxval=scale, dtype=jnp.float32)
        b_hh = jax.random.uniform(k4, (4 * H,),
                                  minval=-scale, maxval=scale, dtype=jnp.float32)
        w_ih_list.append(w_ih.T)                      # (in_dim, 4H)
        w_hh_list.append(w_hh.T)                      # (H, 4H)
        b_list.append((b_ih + b_hh)[None, :])         # (1, 4H)

    return {
        "w_ih0": w_ih_list[0].astype(jnp.bfloat16),                                  # (W+H, 4H)
        "w_ih": jnp.stack(w_ih_list[1:], axis=0).astype(jnp.bfloat16),               # (L-1, H, 4H)
        "w_hh": jnp.stack(w_hh_list, axis=0).astype(jnp.bfloat16),                   # (L, H, 4H)
        "b": jnp.stack(b_list, axis=0),                                              # (L, 1, 4H)
    }


def decoder_forward(params, emb_t, h_t_1_tilde, h_t_1):
    """Mirrors Decoder.forward (eval mode) with one fused pallas_call.

    emb_t:        (B, 1, word_vec_dim)
    h_t_1_tilde:  (B, 1, hidden_size) or None
    h_t_1:        tuple (h0, c0), each (n_layers, B, hidden_size)
    returns (y, (h_new, c_new)) with y: (B, 1, hidden_size)
    """
    h0, c0 = h_t_1
    L, B, H = h0.shape
    if h_t_1_tilde is None:
        h_t_1_tilde = jnp.zeros((B, 1, H), dtype=emb_t.dtype)

    emb = emb_t[:, 0, :]                # (B, W)
    tilde = h_t_1_tilde[:, 0, :]        # (B, H)
    W = emb.shape[-1]

    vmem = pl.BlockSpec(memory_space=pltpu.MemorySpace.VMEM)

    # Advisory cost hint so XLA overlaps this tiny, latency-bound call with the
    # surrounding decode-step HLO.
    flops = 2 * B * 4 * H * ((W + H) + (L - 1) * H + L * H)
    bytes_accessed = (
        2 * (params["w_ih0"].size + params["w_ih"].size + params["w_hh"].size)  # bf16
        + 4 * params["b"].size
        + 4 * (emb.size + tilde.size + h0.size + c0.size)
        + 4 * B * 2 * L * H)
    transcendentals = 9 * L * B * H  # 2 full-width (B,4H) passes + tanh(c) per layer

    kernel = functools.partial(_decoder_step_kernel, L, H)
    packed = pl.pallas_call(
        kernel,
        out_shape=jax.ShapeDtypeStruct((B, 2 * L * H), jnp.float32),
        in_specs=[vmem] * 8,
        out_specs=vmem,
        cost_estimate=pl.CostEstimate(flops=flops,
                                      transcendentals=transcendentals,
                                      bytes_accessed=bytes_accessed),
    )(emb, tilde, h0, c0,
      params["w_ih0"], params["w_ih"], params["w_hh"], params["b"])

    h_new = jnp.transpose(packed[:, :L * H].reshape(B, L, H), (1, 0, 2))  # (L, B, H)
    c_new = jnp.transpose(packed[:, L * H:].reshape(B, L, H), (1, 0, 2))  # (L, B, H)
    y = h_new[-1][:, None, :]                                             # (B, 1, H)
    return y, (h_new, c_new)


def decoder_forward_ref(params, emb_t, h_t_1_tilde, h_t_1):
    """Pure-JAX reference with the same bf16-weight / f32-accumulate numerics."""
    h0, c0 = h_t_1
    L, B, H = h0.shape
    if h_t_1_tilde is None:
        h_t_1_tilde = jnp.zeros((B, 1, H), dtype=emb_t.dtype)
    layer_in = jnp.concatenate([emb_t, h_t_1_tilde], axis=-1)[:, 0, :].astype(jnp.bfloat16)
    hs, cs = [], []
    for l in range(L):
        w_in = params["w_ih0"] if l == 0 else params["w_ih"][l - 1]
        gates = (jnp.dot(layer_in, w_in, preferred_element_type=jnp.float32)
                 + jnp.dot(h0[l].astype(jnp.bfloat16), params["w_hh"][l],
                           preferred_element_type=jnp.float32)
                 + params["b"][l])
        i_g = jax.nn.sigmoid(gates[:, 0 * H:1 * H])
        f_g = jax.nn.sigmoid(gates[:, 1 * H:2 * H])
        g_g = jnp.tanh(gates[:, 2 * H:3 * H])
        o_g = jax.nn.sigmoid(gates[:, 3 * H:4 * H])
        c_new = f_g * c0[l] + i_g * g_g
        h_new = o_g * jnp.tanh(c_new)
        hs.append(h_new)
        cs.append(c_new)
        layer_in = h_new.astype(jnp.bfloat16)
    return hs[-1][:, None, :], (jnp.stack(hs), jnp.stack(cs))


if __name__ == "__main__":
    B = 2
    WORD_VEC_DIM = 32
    HIDDEN = 32
    N_LAYERS = 4

    key = jax.random.PRNGKey(0)
    kp, ke, kt, kh, kc = jax.random.split(key, 5)

    params = init_decoder_params(kp, WORD_VEC_DIM, HIDDEN, N_LAYERS)

    emb_t = jax.random.normal(ke, (B, 1, WORD_VEC_DIM), dtype=jnp.float32)
    h_t_1_tilde = jax.random.normal(kt, (B, 1, HIDDEN), dtype=jnp.float32)
    h0 = jax.random.normal(kh, (N_LAYERS, B, HIDDEN), dtype=jnp.float32)
    c0 = jax.random.normal(kc, (N_LAYERS, B, HIDDEN), dtype=jnp.float32)

    y, (h_new, c_new) = decoder_forward(params, emb_t, h_t_1_tilde, (h0, c0))
    jax.block_until_ready((y, h_new, c_new))

    assert y.shape == (B, 1, HIDDEN)
    assert h_new.shape == (N_LAYERS, B, HIDDEN)
    assert c_new.shape == (N_LAYERS, B, HIDDEN)

    # Numerical sanity check vs. pure-JAX reference using identical matmul numerics.
    y_r, (h_r, c_r) = decoder_forward_ref(params, emb_t, h_t_1_tilde, (h0, c0))
    assert bool(jnp.allclose(y, y_r, atol=1e-3, rtol=1e-3))
    assert bool(jnp.allclose(h_new, h_r, atol=1e-3, rtol=1e-3))
    assert bool(jnp.allclose(c_new, c_r, atol=1e-3, rtol=1e-3))

    # Also exercise the h_t_1_tilde=None branch (zero-filled concat).
    y2, _ = decoder_forward(params, emb_t, None, (h0, c0))
    jax.block_until_ready(y2)

    print("KERNEL_OK")
</pallas_src>

<mosaic_0001>
module attributes {stable_mosaic.version = 11 : i64} {
  func.func @_decoder_step_kernel(%arg0: memref<2x32xf32, #tpu.memory_space<vmem>>, %arg1: memref<2x32xf32, #tpu.memory_space<vmem>>, %arg2: memref<4x2x32xf32, #tpu.memory_space<vmem>>, %arg3: memref<4x2x32xf32, #tpu.memory_space<vmem>>, %arg4: memref<64x128xbf16, #tpu.memory_space<vmem>>, %arg5: memref<3x32x128xbf16, #tpu.memory_space<vmem>>, %arg6: memref<4x32x128xbf16, #tpu.memory_space<vmem>>, %arg7: memref<4x1x128xf32, #tpu.memory_space<vmem>>, %arg8: memref<2x256xf32, #tpu.memory_space<vmem>>) attributes {dimension_semantics = [], scalar_prefetch = 0 : i64, scratch_operands = 0 : i64, tpu.core_type = #tpu.core_type<tc>} {
    %c0 = arith.constant 0 : index
    %c0_0 = arith.constant 0 : index
    %c0_1 = arith.constant 0 : index
    %0 = vector.load %arg2[%c0, %c0_0, %c0_1] : memref<4x2x32xf32, #tpu.memory_space<vmem>>, vector<1x2x32xf32>
    %1 = vector.shape_cast %0 : vector<1x2x32xf32> to vector<2x32xf32>
    %2 = arith.truncf %1 : vector<2x32xf32> to vector<2x32xbf16>
    %c0_2 = arith.constant 0 : index
    %c0_3 = arith.constant 0 : index
    %c0_4 = arith.constant 0 : index
    %3 = vector.load %arg6[%c0_2, %c0_3, %c0_4] : memref<4x32x128xbf16, #tpu.memory_space<vmem>>, vector<1x32x128xbf16>
    %4 = vector.shape_cast %3 : vector<1x32x128xbf16> to vector<32x128xbf16>
    %cst = arith.constant dense<0.000000e+00> : vector<2x128xf32>
    %5 = tpu.matmul %2, %4, %cst {dimension_numbers = #tpu.dot_dimension_numbers<[1], [0], [0], [1], [0, 0, 1, 1], [], []>} : vector<2x32xbf16>, vector<32x128xbf16>, vector<2x128xf32> -> vector<2x128xf32>
    %c0_5 = arith.constant 0 : index
    %c0_6 = arith.constant 0 : index
    %c0_7 = arith.constant 0 : index
    %6 = vector.load %arg7[%c0_5, %c0_6, %c0_7] : memref<4x1x128xf32, #tpu.memory_space<vmem>>, vector<1x1x128xf32>
    %7 = vector.shape_cast %6 : vector<1x1x128xf32> to vector<1x128xf32>
    %8 = vector.broadcast %7 : vector<1x128xf32> to vector<2x128xf32>
    %9 = arith.addf %5, %8 : vector<2x128xf32>
    %c1 = arith.constant 1 : index
    %c0_8 = arith.constant 0 : index
    %c0_9 = arith.constant 0 : index
    %10 = vector.load %arg2[%c1, %c0_8, %c0_9] : memref<4x2x32xf32, #tpu.memory_space<vmem>>, vector<1x2x32xf32>
    %11 = vector.shape_cast %10 : vector<1x2x32xf32> to vector<2x32xf32>
    %12 = arith.truncf %11 : vector<2x32xf32> to vector<2x32xbf16>
    %c1_10 = arith.constant 1 : index
    %c0_11 = arith.constant 0 : index
    %c0_12 = arith.constant 0 : index
    %13 = vector.load %arg6[%c1_10, %c0_11, %c0_12] : memref<4x32x128xbf16, #tpu.memory_space<vmem>>, vector<1x32x128xbf16>
    %14 = vector.shape_cast %13 : vector<1x32x128xbf16> to vector<32x128xbf16>
    %cst_13 = arith.constant dense<0.000000e+00> : vector<2x128xf32>
    %15 = tpu.matmul %12, %14, %cst_13 {dimension_numbers = #tpu.dot_dimension_numbers<[1], [0], [0], [1], [0, 0, 1, 1], [], []>} : vector<2x32xbf16>, vector<32x128xbf16>, vector<2x128xf32> -> vector<2x128xf32>
    %c1_14 = arith.constant 1 : index
    %c0_15 = arith.constant 0 : index
    %c0_16 = arith.constant 0 : index
    %16 = vector.load %arg7[%c1_14, %c0_15, %c0_16] : memref<4x1x128xf32, #tpu.memory_space<vmem>>, vector<1x1x128xf32>
    %17 = vector.shape_cast %16 : vector<1x1x128xf32> to vector<1x128xf32>
    %18 = vector.broadcast %17 : vector<1x128xf32> to vector<2x128xf32>
    %19 = arith.addf %15, %18 : vector<2x128xf32>
    %c2 = arith.constant 2 : index
    %c0_17 = arith.constant 0 : index
    %c0_18 = arith.constant 0 : index
    %20 = vector.load %arg2[%c2, %c0_17, %c0_18] : memref<4x2x32xf32, #tpu.memory_space<vmem>>, vector<1x2x32xf32>
    %21 = vector.shape_cast %20 : vector<1x2x32xf32> to vector<2x32xf32>
    %22 = arith.truncf %21 : vector<2x32xf32> to vector<2x32xbf16>
    %c2_19 = arith.constant 2 : index
    %c0_20 = arith.constant 0 : index
    %c0_21 = arith.constant 0 : index
    %23 = vector.load %arg6[%c2_19, %c0_20, %c0_21] : memref<4x32x128xbf16, #tpu.memory_space<vmem>>, vector<1x32x128xbf16>
    %24 = vector.shape_cast %23 : vector<1x32x128xbf16> to vector<32x128xbf16>
    %cst_22 = arith.constant dense<0.000000e+00> : vector<2x128xf32>
    %25 = tpu.matmul %22, %24, %cst_22 {dimension_numbers = #tpu.dot_dimension_numbers<[1], [0], [0], [1], [0, 0, 1, 1], [], []>} : vector<2x32xbf16>, vector<32x128xbf16>, vector<2x128xf32> -> vector<2x128xf32>
    %c2_23 = arith.constant 2 : index
    %c0_24 = arith.constant 0 : index
    %c0_25 = arith.constant 0 : index
    %26 = vector.load %arg7[%c2_23, %c0_24, %c0_25] : memref<4x1x128xf32, #tpu.memory_space<vmem>>, vector<1x1x128xf32>
    %27 = vector.shape_cast %26 : vector<1x1x128xf32> to vector<1x128xf32>
    %28 = vector.broadcast %27 : vector<1x128xf32> to vector<2x128xf32>
    %29 = arith.addf %25, %28 : vector<2x128xf32>
    %c3 = arith.constant 3 : index
    %c0_26 = arith.constant 0 : index
    %c0_27 = arith.constant 0 : index
    %30 = vector.load %arg2[%c3, %c0_26, %c0_27] : memref<4x2x32xf32, #tpu.memory_space<vmem>>, vector<1x2x32xf32>
    %31 = vector.shape_cast %30 : vector<1x2x32xf32> to vector<2x32xf32>
    %32 = arith.truncf %31 : vector<2x32xf32> to vector<2x32xbf16>
    %c3_28 = arith.constant 3 : index
    %c0_29 = arith.constant 0 : index
    %c0_30 = arith.constant 0 : index
    %33 = vector.load %arg6[%c3_28, %c0_29, %c0_30] : memref<4x32x128xbf16, #tpu.memory_space<vmem>>, vector<1x32x128xbf16>
    %34 = vector.shape_cast %33 : vector<1x32x128xbf16> to vector<32x128xbf16>
    %cst_31 = arith.constant dense<0.000000e+00> : vector<2x128xf32>
    %35 = tpu.matmul %32, %34, %cst_31 {dimension_numbers = #tpu.dot_dimension_numbers<[1], [0], [0], [1], [0, 0, 1, 1], [], []>} : vector<2x32xbf16>, vector<32x128xbf16>, vector<2x128xf32> -> vector<2x128xf32>
    %c3_32 = arith.constant 3 : index
    %c0_33 = arith.constant 0 : index
    %c0_34 = arith.constant 0 : index
    %36 = vector.load %arg7[%c3_32, %c0_33, %c0_34] : memref<4x1x128xf32, #tpu.memory_space<vmem>>, vector<1x1x128xf32>
    %37 = vector.shape_cast %36 : vector<1x1x128xf32> to vector<1x128xf32>
    %38 = vector.broadcast %37 : vector<1x128xf32> to vector<2x128xf32>
    %39 = arith.addf %35, %38 : vector<2x128xf32>
    %c0_35 = arith.constant 0 : index
    %c0_36 = arith.constant 0 : index
    %40 = vector.load %arg0[%c0_35, %c0_36] : memref<2x32xf32, #tpu.memory_space<vmem>>, vector<2x32xf32>
    %c0_37 = arith.constant 0 : index
    %c0_38 = arith.constant 0 : index
    %41 = vector.load %arg1[%c0_37, %c0_38] : memref<2x32xf32, #tpu.memory_space<vmem>>, vector<2x32xf32>
    %42 = tpu.concatenate %40, %41 in 1 : vector<2x32xf32>, vector<2x32xf32> -> vector<2x64xf32>
    %43 = arith.truncf %42 : vector<2x64xf32> to vector<2x64xbf16>
    %c0_39 = arith.constant 0 : index
    %c0_40 = arith.constant 0 : index
    %44 = vector.load %arg4[%c0_39, %c0_40] : memref<64x128xbf16, #tpu.memory_space<vmem>>, vector<64x128xbf16>
    %cst_41 = arith.constant dense<0.000000e+00> : vector<2x128xf32>
    %45 = tpu.matmul %43, %44, %cst_41 {dimension_numbers = #tpu.dot_dimension_numbers<[1], [0], [0], [1], [0, 0, 1, 1], [], []>} : vector<2x64xbf16>, vector<64x128xbf16>, vector<2x128xf32> -> vector<2x128xf32>
    %46 = arith.addf %45, %9 : vector<2x128xf32>
    %47 = arith.negf %46 : vector<2x128xf32>
    %48 = math.exp %47 : vector<2x128xf32>
    %cst_42 = arith.constant 1.000000e+00 : f32
    %49 = vector.broadcast %cst_42 : f32 to vector<2x128xf32>
    %50 = arith.addf %49, %48 : vector<2x128xf32>
    %51 = arith.divf %49, %50 : vector<2x128xf32>
    %52 = math.tanh %46 : vector<2x128xf32>
    %53 = vector.extract_strided_slice %51 {offsets = [0, 0], sizes = [2, 32], strides = [1, 1]} : vector<2x128xf32> to vector<2x32xf32>
    %54 = vector.extract_strided_slice %51 {offsets = [0, 32], sizes = [2, 32], strides = [1, 1]} : vector<2x128xf32> to vector<2x32xf32>
    %55 = vector.extract_strided_slice %52 {offsets = [0, 64], sizes = [2, 32], strides = [1, 1]} : vector<2x128xf32> to vector<2x32xf32>
    %56 = vector.extract_strided_slice %51 {offsets = [0, 96], sizes = [2, 32], strides = [1, 1]} : vector<2x128xf32> to vector<2x32xf32>
    %c0_43 = arith.constant 0 : index
    %c0_44 = arith.constant 0 : index
    %c0_45 = arith.constant 0 : index
    %57 = vector.load %arg3[%c0_43, %c0_44, %c0_45] : memref<4x2x32xf32, #tpu.memory_space<vmem>>, vector<1x2x32xf32>
    %58 = vector.shape_cast %57 : vector<1x2x32xf32> to vector<2x32xf32>
    %59 = arith.mulf %54, %58 : vector<2x32xf32>
    %60 = arith.mulf %53, %55 : vector<2x32xf32>
    %61 = arith.addf %59, %60 : vector<2x32xf32>
    %62 = math.tanh %61 : vector<2x32xf32>
    %63 = arith.mulf %56, %62 : vector<2x32xf32>
    %64 = arith.truncf %63 : vector<2x32xf32> to vector<2x32xbf16>
    %c0_46 = arith.constant 0 : index
    %c0_47 = arith.constant 0 : index
    %c0_48 = arith.constant 0 : index
    %65 = vector.load %arg5[%c0_46, %c0_47, %c0_48] : memref<3x32x128xbf16, #tpu.memory_space<vmem>>, vector<1x32x128xbf16>
    %66 = vector.shape_cast %65 : vector<1x32x128xbf16> to vector<32x128xbf16>
    %cst_49 = arith.constant dense<0.000000e+00> : vector<2x128xf32>
    %67 = tpu.matmul %64, %66, %cst_49 {dimension_numbers = #tpu.dot_dimension_numbers<[1], [0], [0], [1], [0, 0, 1, 1], [], []>} : vector<2x32xbf16>, vector<32x128xbf16>, vector<2x128xf32> -> vector<2x128xf32>
    %68 = arith.addf %67, %19 : vector<2x128xf32>
    %69 = arith.negf %68 : vector<2x128xf32>
    %70 = math.exp %69 : vector<2x128xf32>
    %cst_50 = arith.constant 1.000000e+00 : f32
    %71 = vector.broadcast %cst_50 : f32 to vector<2x128xf32>
    %72 = arith.addf %71, %70 : vector<2x128xf32>
    %73 = arith.divf %71, %72 : vector<2x128xf32>
    %74 = math.tanh %68 : vector<2x128xf32>
    %75 = vector.extract_strided_slice %73 {offsets = [0, 0], sizes = [2, 32], strides = [1, 1]} : vector<2x128xf32> to vector<2x32xf32>
    %76 = vector.extract_strided_slice %73 {offsets = [0, 32], sizes = [2, 32], strides = [1, 1]} : vector<2x128xf32> to vector<2x32xf32>
    %77 = vector.extract_strided_slice %74 {offsets = [0, 64], sizes = [2, 32], strides = [1, 1]} : vector<2x128xf32> to vector<2x32xf32>
    %78 = vector.extract_strided_slice %73 {offsets = [0, 96], sizes = [2, 32], strides = [1, 1]} : vector<2x128xf32> to vector<2x32xf32>
    %c1_51 = arith.constant 1 : index
    %c0_52 = arith.constant 0 : index
    %c0_53 = arith.constant 0 : index
    %79 = vector.load %arg3[%c1_51, %c0_52, %c0_53] : memref<4x2x32xf32, #tpu.memory_space<vmem>>, vector<1x2x32xf32>
    %80 = vector.shape_cast %79 : vector<1x2x32xf32> to vector<2x32xf32>
    %81 = arith.mulf %76, %80 : vector<2x32xf32>
    %82 = arith.mulf %75, %77 : vector<2x32xf32>
    %83 = arith.addf %81, %82 : vector<2x32xf32>
    %84 = math.tanh %83 : vector<2x32xf32>
    %85 = arith.mulf %78, %84 : vector<2x32xf32>
    %86 = arith.truncf %85 : vector<2x32xf32> to vector<2x32xbf16>
    %c1_54 = arith.constant 1 : index
    %c0_55 = arith.constant 0 : index
    %c0_56 = arith.constant 0 : index
    %87 = vector.load %arg5[%c1_54, %c0_55, %c0_56] : memref<3x32x128xbf16, #tpu.memory_space<vmem>>, vector<1x32x128xbf16>
    %88 = vector.shape_cast %87 : vector<1x32x128xbf16> to vector<32x128xbf16>
    %cst_57 = arith.constant dense<0.000000e+00> : vector<2x128xf32>
    %89 = tpu.matmul %86, %88, %cst_57 {dimension_numbers = #tpu.dot_dimension_numbers<[1], [0], [0], [1], [0, 0, 1, 1], [], []>} : vector<2x32xbf16>, vector<32x128xbf16>, vector<2x128xf32> -> vector<2x128xf32>
    %90 = arith.addf %89, %29 : vector<2x128xf32>
    %91 = arith.negf %90 : vector<2x128xf32>
    %92 = math.exp %91 : vector<2x128xf32>
    %cst_58 = arith.constant 1.000000e+00 : f32
    %93 = vector.broadcast %cst_58 : f32 to vector<2x128xf32>
    %94 = arith.addf %93, %92 : vector<2x128xf32>
    %95 = arith.divf %93, %94 : vector<2x128xf32>
    %96 = math.tanh %90 : vector<2x128xf32>
    %97 = vector.extract_strided_slice %95 {offsets = [0, 0], sizes = [2, 32], strides = [1, 1]} : vector<2x128xf32> to vector<2x32xf32>
    %98 = vector.extract_strided_slice %95 {offsets = [0, 32], sizes = [2, 32], strides = [1, 1]} : vector<2x128xf32> to vector<2x32xf32>
    %99 = vector.extract_strided_slice %96 {offsets = [0, 64], sizes = [2, 32], strides = [1, 1]} : vector<2x128xf32> to vector<2x32xf32>
    %100 = vector.extract_strided_slice %95 {offsets = [0, 96], sizes = [2, 32], strides = [1, 1]} : vector<2x128xf32> to vector<2x32xf32>
    %c2_59 = arith.constant 2 : index
    %c0_60 = arith.constant 0 : index
    %c0_61 = arith.constant 0 : index
    %101 = vector.load %arg3[%c2_59, %c0_60, %c0_61] : memref<4x2x32xf32, #tpu.memory_space<vmem>>, vector<1x2x32xf32>
    %102 = vector.shape_cast %101 : vector<1x2x32xf32> to vector<2x32xf32>
    %103 = arith.mulf %98, %102 : vector<2x32xf32>
    %104 = arith.mulf %97, %99 : vector<2x32xf32>
    %105 = arith.addf %103, %104 : vector<2x32xf32>
    %106 = math.tanh %105 : vector<2x32xf32>
    %107 = arith.mulf %100, %106 : vector<2x32xf32>
    %108 = arith.truncf %107 : vector<2x32xf32> to vector<2x32xbf16>
    %c2_62 = arith.constant 2 : index
    %c0_63 = arith.constant 0 : index
    %c0_64 = arith.constant 0 : index
    %109 = vector.load %arg5[%c2_62, %c0_63, %c0_64] : memref<3x32x128xbf16, #tpu.memory_space<vmem>>, vector<1x32x128xbf16>
    %110 = vector.shape_cast %109 : vector<1x32x128xbf16> to vector<32x128xbf16>
    %cst_65 = arith.constant dense<0.000000e+00> : vector<2x128xf32>
    %111 = tpu.matmul %108, %110, %cst_65 {dimension_numbers = #tpu.dot_dimension_numbers<[1], [0], [0], [1], [0, 0, 1, 1], [], []>} : vector<2x32xbf16>, vector<32x128xbf16>, vector<2x128xf32> -> vector<2x128xf32>
    %112 = arith.addf %111, %39 : vector<2x128xf32>
    %113 = arith.negf %112 : vector<2x128xf32>
    %114 = math.exp %113 : vector<2x128xf32>
    %cst_66 = arith.constant 1.000000e+00 : f32
    %115 = vector.broadcast %cst_66 : f32 to vector<2x128xf32>
    %116 = arith.addf %115, %114 : vector<2x128xf32>
    %117 = arith.divf %115, %116 : vector<2x128xf32>
    %118 = math.tanh %112 : vector<2x128xf32>
    %119 = vector.extract_strided_slice %117 {offsets = [0, 0], sizes = [2, 32], strides = [1, 1]} : vector<2x128xf32> to vector<2x32xf32>
    %120 = vector.extract_strided_slice %117 {offsets = [0, 32], sizes = [2, 32], strides = [1, 1]} : vector<2x128xf32> to vector<2x32xf32>
    %121 = vector.extract_strided_slice %118 {offsets = [0, 64], sizes = [2, 32], strides = [1, 1]} : vector<2x128xf32> to vector<2x32xf32>
    %122 = vector.extract_strided_slice %117 {offsets = [0, 96], sizes = [2, 32], strides = [1, 1]} : vector<2x128xf32> to vector<2x32xf32>
    %c3_67 = arith.constant 3 : index
    %c0_68 = arith.constant 0 : index
    %c0_69 = arith.constant 0 : index
    %123 = vector.load %arg3[%c3_67, %c0_68, %c0_69] : memref<4x2x32xf32, #tpu.memory_space<vmem>>, vector<1x2x32xf32>
    %124 = vector.shape_cast %123 : vector<1x2x32xf32> to vector<2x32xf32>
    %125 = arith.mulf %120, %124 : vector<2x32xf32>
    %126 = arith.mulf %119, %121 : vector<2x32xf32>
    %127 = arith.addf %125, %126 : vector<2x32xf32>
    %128 = math.tanh %127 : vector<2x32xf32>
    %129 = arith.mulf %122, %128 : vector<2x32xf32>
    %130 = tpu.concatenate %63, %85, %107, %129, %61, %83, %105, %127 in 1 : vector<2x32xf32>, vector<2x32xf32>, vector<2x32xf32>, vector<2x32xf32>, vector<2x32xf32>, vector<2x32xf32>, vector<2x32xf32>, vector<2x32xf32> -> vector<2x256xf32>
    %c0_70 = arith.constant 0 : index
    %c0_71 = arith.constant 0 : index
    %131 = vector.load %arg8[%c0_70, %c0_71] : memref<2x256xf32, #tpu.memory_space<vmem>>, vector<2x256xf32>
    tpu.vector_store %arg8[%c0_70, %c0_71], %130 {strides = array<i32>} : memref<2x256xf32, #tpu.memory_space<vmem>>, vector<2x256xf32>,
    return
  }
}

</mosaic_0001>

<bundles_post_ra>
// kernel: tpu_custom_call.1
= control target key start
LH: loop header
LB: loop body
LE: loop exit
PB: predicated region body
PF: predicated region fallthrough
CT: control target
= control target key end

     0   :  { %13 = vsyncpa [#allocation3], 0  ;;  %s1204_s0 = inlined_call_operand.hbm [shape: f32[2,32], index: 0, kind: input, shape index: {}]   ;;  %s1205_s1 = inlined_call_operand.hbm [shape: f32[2,32], index: 1, kind: input, shape index: {}]   ;;  %s1206_s2 = inlined_call_operand.hbm [shape: f32[4,2,32], index: 2, kind: input, shape index: {}]   ;;  %s1207_s3 = inlined_call_operand.hbm [shape: f32[4,2,32], index: 3, kind: input, shape index: {}]   ;;  %s1208_s4 = inlined_call_operand.hbm [shape: bf16[64,128], index: 4, kind: input, shape index: {}]   ;;  %s1209_s5 = inlined_call_operand.hbm [shape: bf16[3,32,128], index: 5, kind: input, shape index: {}]   ;;  %s1210_s6 = inlined_call_operand.hbm [shape: bf16[4,32,128], index: 6, kind: input, shape index: {}]   ;;  %s1211_s7 = inlined_call_operand.vmem [shape: f32[4,1,128], index: 7, kind: input, shape index: {}]   ;;  %s1212_s8 = inlined_call_operand.hbm [shape: f32[2,256], index: 8, kind: output, shape index: {}]  }
   0x1   :  { %14 = vsyncpa [#allocation6], 0 }
   0x2   :  { %15 = vsyncpa [#allocation9], 0 }
   0x3   :  { %16 = vsyncpa [#allocation12], 0  ;;  %s34_s29 = sshll.u32 %s1205_s1, 4  ;;  %s35_s29 = int_to_ptr.hbm [resolvable:$true] %s34_s29 }
   0x4   :  { %17 = vsyncpa [#allocation4], 0  ;;  %s1050_s30 = smov [#allocation5]   ;;  %s57_s12 = sshll.u32 %s1207_s3, 4  ;;  %s58_s12 = int_to_ptr.hbm [resolvable:$true] %s57_s12 }
   0x5   :  { %s36_s9 = sshll.u32 %s1050_s30, 4  ;;  %s1051_s13 = smov [#allocation8]   ;;  %s37_s9 = int_to_ptr.vmem [resolvable:$true] %s36_s9 }
   0x6   :  { %39 = dma.hbm_to_vmem [thread:$0]  %s35_s29, 32, %s37_s9, [#allocation6]  }
   0x7   :  { %s59_s14 = sshll.u32 %s1051_s13, 4  ;;  %s1052_s15 = smov 32   ;;  %s60_s14 = int_to_ptr.vmem [resolvable:$true] %s59_s14 }
   0x8   :  { %s1053_s16 = smov 2   ;;  %s83_s18 = sshll.u32 %s1209_s5, 4  ;;  %s84_s18 = int_to_ptr.hbm [resolvable:$true] %s83_s18 }
   0x9   :  { %65 = dma.hbm_to_vmem [thread:$0]  %s58_s12, 128, %s60_s14, [#allocation9], %s1052_s15, %s1052_s15, %s1053_s16  }
   0xa   :  { %s1054_s19 = smov [#allocation11]   ;;  %s23_s3 = sshll.u32 %s1204_s0, 4  ;;  %s24_s3 = int_to_ptr.hbm [resolvable:$true] %s23_s3 }
   0xb   :  { %s85_s20 = sshll.u32 %s1054_s19, 4  ;;  %s1055_s23 = smov 64   ;;  %s86_s20 = int_to_ptr.vmem [resolvable:$true] %s85_s20 }
   0xc   :  { %s1056_s24 = smov 4   ;;  %s1057_s25 = smov [#allocation2]  }
   0xd   :  { %91 = dma.hbm_to_vmem [thread:$0]  %s84_s18, 768, %s86_s20, [#allocation12], %s1055_s23, %s1055_s23, %s1056_s24  }
   0xe   :  { %s25_s26 = sshll.u32 %s1057_s25, 4  ;;  %s44_s5 = sshll.u32 %s1206_s2, 4  ;;  %s26_s26 = int_to_ptr.vmem [resolvable:$true] %s25_s26  ;;  %s45_s5 = int_to_ptr.hbm [resolvable:$true] %s44_s5 }
   0xf   :  { %28 = dma.hbm_to_vmem [thread:$0]  %s24_s3, 32, %s26_s26, [#allocation3]  }
  0x10   :  { %s70_s9 = sshll.u32 %s1208_s4, 4  ;;  %s1058_s0 = smov [#allocation7]   ;;  %s71_s9 = int_to_ptr.hbm [resolvable:$true] %s70_s9 }
  0x11   :  { %s46_s10 = sshll.u32 %s1058_s0, 4  ;;  %s1059_s11 = smov [#allocation10]   ;;  %s47_s10 = int_to_ptr.vmem [resolvable:$true] %s46_s10 }
  0x12   :  { %52 = dma.hbm_to_vmem [thread:$0]  %s45_s5, 128, %s47_s10, [#allocation6], %s1052_s15, %s1052_s15, %s1053_s16  }
  0x13   :  { %s72_s12 = sshll.u32 %s1059_s11, 4  ;;  %s96_s2 = sshll.u32 %s1210_s6, 4  ;;  %s73_s12 = int_to_ptr.vmem [resolvable:$true] %s72_s12  ;;  %s97_s2 = int_to_ptr.hbm [resolvable:$true] %s96_s2 }
  0x14   :  { %78 = dma.hbm_to_vmem [thread:$0]  %s71_s9, 512, %s73_s12, [#allocation9], %s1055_s23, %s1055_s23, %s1056_s24  }
  0x15   :  { %s1060_s1 = smov [#allocation13]  }
  0x16   :  { %s98_s4 = sshll.u32 %s1060_s1, 4  ;;  %s99_s4 = int_to_ptr.vmem [resolvable:$true] %s98_s4 }
  0x17   :  { %104 = dma.hbm_to_vmem [thread:$0]  %s97_s2, 1024, %s99_s4, [#allocation12], %s1055_s23, %s1055_s23, %s1056_s24  }
  0x18   :  { %1040 = dma.done.wait [#allocation3], 32  }
  0x19   :  { %1041 = vsyncadd [#allocation3], 4294967264 }
  0x1a   :  { %1042 = dma.done.wait [#allocation6], 160  }
  0x1b   :  { %1043 = vsyncadd [#allocation6], 4294967136 }
  0x1c   :  { %1044 = dma.done.wait [#allocation9], 640  }
  0x1d   :  { %1045 = vsyncadd [#allocation9], 4294966656 }
  0x1e   :  { %1046 = dma.done.wait [#allocation12], 1792  }
  0x1f   :  { %1047 = vsyncadd [#allocation12], 4294965504  ;;  %v299_v0 = vld [vmem:[#allocation5] sm:$0x3]  ;;  %v782_v1 = vld [vmem:[#allocation13 + $0x8] sm:$0xff]  ;;  %vm158_vm0 = vcmask 261120  }
  0x20   :  { %301 = vrot.lane.b32.xlu0 %v299_v0, %s1052_s15  ;;  %v781_v2 = vld [vmem:[#allocation13] sm:$0xff]  ;;  %168 = vmatpush.bf16.msra.mxu0 %v782_v1  ;;  %v792_v4 = vld [vmem:[#allocation10 + $0x18] sm:$0xff]  ;;  %v790_v7 = vld [vmem:[#allocation10 + $0x8] sm:$0xff]  ;;  %vm338_vm1 = vcmask 523264   ;;  %s1061_s3 = smov 96  }
  0x21   :  { %v136_v3 = vld [vmem:[#allocation7] sm:$0x3]  ;;  %v789_v8 = vld [vmem:[#allocation10] sm:$0xff]  ;;  %v375_v9 = vld [vmem:[#allocation8] sm:$0x3] }
  0x22   :  { %v137_v5 = vpack.c.bf16 %v136_v3, %v136_v3  ;;  %v791_v6 = vld [vmem:[#allocation10 + $0x10] sm:$0xff]  ;;  %377 = vrot.lane.b32.xlu1 %v375_v9, %s1052_s15  ;;  %v298_v10 = vld [vmem:[#allocation2] sm:$0x3]  ;;  %v783_v43 = vld [vmem:[#allocation13 + $0x10] sm:$0xff] }
  0x23   :  { %v812_v16 = vld [vmem:[%s1211_s7] ss:$0 sm:$0xff]  ;;  %v176_v44 = vld [vmem:[#allocation7 + $0x2] sm:$0x3]  ;;  %v793_v47 = vld [vmem:[#allocation11] sm:$0xff] }
  0x24   :  { %169 = vmatpush.bf16.msra.mxu0 %v781_v2  ;;  %v784_v42 = vld [vmem:[#allocation13 + $0x18] sm:$0xff]  ;;  %v177_v46 = vpack.c.bf16 %v176_v44, %v176_v44  ;;  %v454_v51 = vld [vmem:[#allocation8 + $0x2] sm:$0x3] }
  0x25   :  { %209 = vmatpush.bf16.msra.mxu1 %v784_v42  ;;  %v794_v45 = vld [vmem:[#allocation11 + $0x8] sm:$0xff] }
  0x26   :  { %v813_v55 = vld [vmem:[%s1211_s7 + $0x1] ss:$0 sm:$0xff] }
  0x27   :  { %702 = vmatmul.msk.bf16.vlgmr.msra.gmra.mxu0 %vm158_vm0, %v137_v5 }
  0x28   :  { %346 = vmatpush.bf16.msrb.mxu0 %v792_v4 }
  0x29   :  { %210 = vmatpush.bf16.msra.mxu1 %v783_v43 }
  0x2c   :  { %347 = vmatpush.bf16.msrb.mxu0 %v791_v6  ;;  %712 = vmatmul.msk.bf16.vlgmr.msra.gmra.mxu1 %vm158_vm0, %v177_v46 }
  0x2d   :  { %426 = vmatpush.bf16.msrb.mxu1 %v794_v45 }
  0x30   :  { %348 = vmatpush.bf16.msrb.mxu0 %v790_v7 }
  0x31   :  { %427 = vmatpush.bf16.msrb.mxu1 %v793_v47 }
  0x34   :  { %349 = vmatpush.bf16.msrb.mxu0 %v789_v8 }
  0x92   :  { %v302_v11 = vpop.permute.xlu0 %301 }
  0x93   :  { %v304_v12 = vsel %vm158_vm0, %v298_v10, %v302_v11 }
  0x94   :  { %v305_v13 = vpack.c.bf16 %v304_v12, %v304_v12  ;;  %v378_v37 = vpop.permute.xlu1 %377 }
  0x96   :  { %749 = vmatmul.msk.bf16.vlgmr.msrb.gmra.mxu0 %vm338_vm1, %v305_v13 }
  0xa4   :  { %v171_v14 = vpop.f32.mrf.mxu0 }
  0xa5   :  { %v172_v17 = vadd.f32 %v812_v16, %v171_v14 }
  0xa9   :  { %v212_v53 = vpop.f32.mrf.mxu1 }
  0xaa   :  { %v213_v56 = vadd.f32 %v813_v55, %v212_v53 }
  0xac   :  { %v173_v15 = vpop.f32.mrf.mxu0 }
  0xb1   :  { %v214_v54 = vpop.f32.mrf.mxu1 }
 0x113   :  { %v351_v18 = vpop.f32.mrf.mxu0 }
 0x114   :  { %v352_v19 = vadd.f32 %v351_v18, %v172_v17  ;;  %v786_v17 = vld [vmem:[#allocation13 + $0x28] sm:$0xff]  ;;  %v785_v18 = vld [vmem:[#allocation13 + $0x20] sm:$0xff] }
 0x115   :  { %250 = vmatpush.bf16.msra.mxu2 %v786_v17 }
 0x116   :  { %816 = vtanh.f32 %v352_v19  ;;  %v750_v22 = vmul.f32 -1.442695, %v352_v19  ;;  %v217_v19 = vld [vmem:[#allocation7 + $0x4] sm:$0x3] }
 0x118   :  { %818 = vpow2.f32 %v750_v22  ;;  %v795_v22 = vld [vmem:[#allocation11 + $0x10] sm:$0xff] }
 0x119   :  { %251 = vmatpush.bf16.msra.mxu2 %v785_v18 }
 0x11b   :  { %v353_v20 = vpop.f32.mrf.mxu0 }
 0x11c   :  { %v817_v21 = vpop.eup %816  ;;  %v796_v20 = vld [vmem:[#allocation11 + $0x18] sm:$0xff] }
 0x11d   :  { %382 = vrot.lane.b32.xlu0 %v817_v21, %s1055_s23  ;;  %v218_v21 = vpack.c.bf16 %v217_v19, %v217_v19  ;;  %506 = vmatpush.bf16.msrb.mxu2 %v796_v20 }
 0x11e   :  { %v819_v23 = vpop.eup %818 }
 0x11f   :  { %v358_v24 = vadd.f32 1.0, %v819_v23  ;;  %722 = vmatmul.msk.bf16.vlgmr.msra.gmra.mxu2 %vm158_vm0, %v218_v21 }
 0x121   :  { %820 = vrcp.f32 %v358_v24  ;;  %v370_v30 = vand.u32 2147483648, %v358_v24  ;;  %vm364_vm3 = vweird.f32 %v358_v24  ;;  %v368_v31 = vand.u32 2147483647, %v358_v24  ;;  %507 = vmatpush.bf16.msrb.mxu2 %v795_v22 }
 0x123   :  { %v371_v33 = vor.u32 1.1754944e-38, %v370_v30  ;;  %vm369_vm5 = vcmp.eq.f32.partialorder %v368_v31, 8.507059e+37  ;;  %v814_v30 = vld [vmem:[%s1211_s7 + $0x2] ss:$0 sm:$0xff] }
 0x127   :  { %v821_v25 = vpop.eup %820 }
 0x128   :  { %v360_v26 = vmul.f32 %v821_v25, %v358_v24  ;;  %vm365_vm2 = vweird.f32 %v821_v25 }
 0x129   :  { %vm366_vm4 = vmor %vm364_vm3, %vm365_vm2 }
 0x12a   :  { %v361_v27 = vsub.f32 1.0, %v360_v26  ;;  %v534_v26 = vld [vmem:[#allocation8 + $0x4] sm:$0x3] }
 0x12c   :  { %v362_v28 = vmul.f32 %v821_v25, %v361_v27 }
 0x12e   :  { %v363_v29 = vadd.f32 %v821_v25, %v362_v28 }
 0x130   :  { %v367_v32 = vsel %vm366_vm4, %v821_v25, %v363_v29  ;;  %vm662_vm4 = vcmask 785408  }
 0x131   :  { %v372_v34 = vsel %vm369_vm5, %v371_v33, %v367_v32  ;;  %vm670_vm5 = vcmask 1041408  }
 0x132   :  { %v380_v38 = vmul.f32 %v378_v37, %v372_v34 }
 0x18f   :  { %v383_v35 = vpop.permute.xlu0 %382 }
 0x190   :  { %v385_v36 = vmul.f32 %v383_v35, %v372_v34 }
 0x192   :  { %387 = vrot.lane.b32.xlu1 %v385_v36, %s1052_s15 }
 0x19a   :  { %456 = vrot.lane.b32.xlu1 %v454_v51, %s1052_s15 }
 0x1a2   :  { %v253_v27 = vpop.f32.mrf.mxu2 }
 0x1a3   :  { %v254_v31 = vadd.f32 %v814_v30, %v253_v27 }
 0x1aa   :  { %v255_v29 = vpop.f32.mrf.mxu2 }
 0x204   :  { %v388_v39 = vpop.permute.xlu1 %387 }
 0x205   :  { %v1149_v40 = vadd.f32 %v388_v39, %v380_v38 }
 0x207   :  { %822 = vtanh.f32 %v1149_v40 }
 0x20c   :  { %v457_v12 = vpop.permute.xlu1 %456 }
 0x20d   :  { %v823_v41 = vpop.eup %822 }
 0x20e   :  { %393 = vrot.lane.b32.xlu2 %v823_v41, %s1055_s23 }
 0x268   :  { %v394_v48 = vpop.permute.xlu2 %393 }
 0x269   :  { %v1154_v49 = vmul.f32 %v394_v48, %v372_v34 }
 0x26b   :  { %v397_v50 = vpack.c.bf16 %v1154_v49, %v1154_v49 }
 0x26d   :  { %403 = vrot.lane.b32.xlu2 %v397_v50, %s1052_s15 }
 0x2c7   :  { %v404_v52 = vpop.permute.xlu2 %403 }
 0x2c8   :  { %759 = vmatmul.msk.bf16.vlgmr.msrb.gmra.mxu1 %vm158_vm0, %v404_v52 }
 0x345   :  { %v429_v57 = vpop.f32.mrf.mxu1 }
 0x346   :  { %v430_v58 = vadd.f32 %v429_v57, %v213_v56 }
 0x348   :  { %824 = vtanh.f32 %v430_v58  ;;  %v760_v61 = vmul.f32 -1.442695, %v430_v58  ;;  %v614_v58 = vld [vmem:[#allocation8 + $0x6] sm:$0x3] }
 0x34a   :  { %826 = vpow2.f32 %v760_v61  ;;  %v258_v61 = vld [vmem:[#allocation7 + $0x6] sm:$0x3] }
 0x34d   :  { %v431_v59 = vpop.f32.mrf.mxu1 }
 0x34e   :  { %v825_v60 = vpop.eup %824  ;;  %v788_v59 = vld [vmem:[#allocation13 + $0x38] sm:$0xff] }
 0x34f   :  { %461 = vrot.lane.b32.xlu0 %v825_v60, %s1055_s23  ;;  %291 = vmatpush.bf16.msra.mxu3 %v788_v59  ;;  %v787_v60 = vld [vmem:[#allocation13 + $0x30] sm:$0xff] }
 0x350   :  { %v827_v62 = vpop.eup %826 }
 0x351   :  { %v436_v63 = vadd.f32 1.0, %v827_v62  ;;  %v798_v62 = vld [vmem:[#allocation11 + $0x28] sm:$0xff] }
 0x353   :  { %828 = vrcp.f32 %v436_v63  ;;  %v448_v5 = vand.u32 2147483648, %v436_v63  ;;  %vm442_vm7 = vweird.f32 %v436_v63  ;;  %v446_v6 = vand.u32 2147483647, %v436_v63  ;;  %292 = vmatpush.bf16.msra.mxu3 %v787_v60 }
 0x355   :  { %v449_v8 = vor.u32 1.1754944e-38, %v448_v5  ;;  %vm447_vm9 = vcmp.eq.f32.partialorder %v446_v6, 8.507059e+37 }
 0x357   :  { %586 = vmatpush.bf16.msrb.mxu3 %v798_v62 }
 0x359   :  { %v829_v0 = vpop.eup %828 }
 0x35a   :  { %v438_v1 = vmul.f32 %v829_v0, %v436_v63  ;;  %vm443_vm6 = vweird.f32 %v829_v0  ;;  %v259_v63 = vpack.c.bf16 %v258_v61, %v258_v61 }
 0x35b   :  { %vm444_vm8 = vmor %vm442_vm7, %vm443_vm6 }
 0x35c   :  { %v439_v2 = vsub.f32 1.0, %v438_v1  ;;  %732 = vmatmul.msk.bf16.vlgmr.msra.gmra.mxu3 %vm158_vm0, %v259_v63 }
 0x35e   :  { %v440_v3 = vmul.f32 %v829_v0, %v439_v2 }
 0x360   :  { %v441_v4 = vadd.f32 %v829_v0, %v440_v3 }
 0x362   :  { %v445_v7 = vsel %vm444_vm8, %v829_v0, %v441_v4  ;;  %v797_v0 = vld [vmem:[#allocation11 + $0x20] sm:$0xff] }
 0x363   :  { %v450_v9 = vsel %vm447_vm9, %v449_v8, %v445_v7  ;;  %587 = vmatpush.bf16.msrb.mxu3 %v797_v0  ;;  %v815_v7 = vld [vmem:[%s1211_s7 + $0x3] ss:$0 sm:$0xff]  ;;  %s1062_s7 = smov [#allocation14]  }
 0x364   :  { %v459_v13 = vmul.f32 %v457_v12, %v450_v9 }
 0x3c1   :  { %v462_v10 = vpop.permute.xlu0 %461 }
 0x3c2   :  { %v464_v11 = vmul.f32 %v462_v10, %v450_v9 }
 0x3c4   :  { %466 = vrot.lane.b32.xlu2 %v464_v11, %s1052_s15 }
 0x3df   :  { %v294_v5 = vpop.f32.mrf.mxu3 }
 0x3e0   :  { %v295_v8 = vadd.f32 %v815_v7, %v294_v5 }
 0x3e7   :  { %v296_v6 = vpop.f32.mrf.mxu3 }
 0x41e   :  { %v467_v14 = vpop.permute.xlu2 %466 }
 0x41f   :  { %v1166_v15 = vadd.f32 %v467_v14, %v459_v13 }
 0x421   :  { %830 = vtanh.f32 %v1166_v15 }
 0x427   :  { %v831_v16 = vpop.eup %830 }
 0x428   :  { %472 = vrot.lane.b32.xlu0 %v831_v16, %s1055_s23 }
 0x430   :  { %536 = vrot.lane.b32.xlu0 %v534_v26, %s1052_s15 }
 0x49a   :  { %v473_v23 = vpop.permute.xlu0 %472 }
 0x49b   :  { %v475_v24 = vmul.f32 %v473_v23, %v450_v9 }
 0x49d   :  { %v476_v25 = vpack.c.bf16 %v475_v24, %v475_v24 }
 0x49f   :  { %483 = vrot.lane.b32.xlu1 %v476_v25, %s1052_s15 }
 0x4a2   :  { %v537_v53 = vpop.permute.xlu0 %536 }
 0x511   :  { %v484_v28 = vpop.permute.xlu1 %483 }
 0x512   :  { %769 = vmatmul.msk.bf16.vlgmr.msrb.gmra.mxu2 %vm158_vm0, %v484_v28 }
 0x595   :  { %v509_v32 = vpop.f32.mrf.mxu2 }
 0x596   :  { %v510_v33 = vadd.f32 %v509_v32, %v254_v31 }
 0x598   :  { %832 = vtanh.f32 %v510_v33  ;;  %v770_v36 = vmul.f32 -1.442695, %v510_v33 }
 0x59a   :  { %834 = vpow2.f32 %v770_v36 }
 0x59d   :  { %v511_v34 = vpop.f32.mrf.mxu2 }
 0x59e   :  { %v833_v35 = vpop.eup %832 }
 0x59f   :  { %541 = vrot.lane.b32.xlu2 %v833_v35, %s1055_s23 }
 0x5a0   :  { %v835_v37 = vpop.eup %834 }
 0x5a1   :  { %v516_v38 = vadd.f32 1.0, %v835_v37 }
 0x5a3   :  { %836 = vrcp.f32 %v516_v38  ;;  %v528_v45 = vand.u32 2147483648, %v516_v38  ;;  %vm522_vm11 = vweird.f32 %v516_v38  ;;  %v526_v46 = vand.u32 2147483647, %v516_v38 }
 0x5a5   :  { %v529_v48 = vor.u32 1.1754944e-38, %v528_v45  ;;  %vm527_vm13 = vcmp.eq.f32.partialorder %v526_v46, 8.507059e+37 }
 0x5a9   :  { %v837_v39 = vpop.eup %836 }
 0x5aa   :  { %v518_v41 = vmul.f32 %v837_v39, %v516_v38  ;;  %vm523_vm10 = vweird.f32 %v837_v39 }
 0x5ab   :  { %vm524_vm12 = vmor %vm522_vm11, %vm523_vm10 }
 0x5ac   :  { %v519_v42 = vsub.f32 1.0, %v518_v41 }
 0x5ae   :  { %v520_v43 = vmul.f32 %v837_v39, %v519_v42 }
 0x5b0   :  { %v521_v44 = vadd.f32 %v837_v39, %v520_v43 }
 0x5b2   :  { %v525_v47 = vsel %vm524_vm12, %v837_v39, %v521_v44 }
 0x5b3   :  { %v530_v50 = vsel %vm527_vm13, %v529_v48, %v525_v47 }
 0x5b4   :  { %v539_v54 = vmul.f32 %v537_v53, %v530_v50 }
 0x5f9   :  { %v542_v51 = vpop.permute.xlu2 %541 }
 0x5fa   :  { %v544_v52 = vmul.f32 %v542_v51, %v530_v50 }
 0x5fc   :  { %546 = vrot.lane.b32.xlu1 %v544_v52, %s1052_s15 }
 0x66e   :  { %v547_v55 = vpop.permute.xlu1 %546 }
 0x66f   :  { %v549_v56 = vadd.f32 %v547_v55, %v539_v54 }
 0x671   :  { %838 = vtanh.f32 %v549_v56 }
 0x677   :  { %v839_v57 = vpop.eup %838 }
 0x678   :  { %552 = vrot.lane.b32.xlu2 %v839_v57, %s1055_s23 }
 0x680   :  { %616 = vrot.lane.b32.xlu2 %v614_v58, %s1052_s15 }
 0x688   :  { %653 = vrot.lane.b32.xlu2 %v549_v56, %s1052_s15 }
 0x690   :  { %641 = vrot.lane.b32.xlu2 %v475_v24, %s1055_s23 }
 0x6d2   :  { %v553_v1 = vpop.permute.xlu2 %552 }
 0x6d3   :  { %v555_v2 = vmul.f32 %v553_v1, %v530_v50 }
 0x6d5   :  { %v556_v3 = vpack.c.bf16 %v555_v2, %v555_v2 }
 0x6d7   :  { %563 = vrot.lane.b32.xlu0 %v556_v3, %s1052_s15 }
 0x6da   :  { %v617_v27 = vpop.permute.xlu2 %616 }
 0x6e2   :  { %v654_v34 = vpop.permute.xlu2 %653 }
 0x6ea   :  { %v642_v39 = vpop.permute.xlu2 %641 }
 0x749   :  { %v564_v4 = vpop.permute.xlu0 %563 }
 0x74a   :  { %779 = vmatmul.msk.bf16.vlgmr.msrb.gmra.mxu3 %vm158_vm0, %v564_v4 }
 0x7cd   :  { %v589_v9 = vpop.f32.mrf.mxu3 }
 0x7ce   :  { %v590_v10 = vadd.f32 %v589_v9, %v295_v8 }
 0x7d0   :  { %840 = vtanh.f32 %v590_v10  ;;  %v780_v13 = vmul.f32 -1.442695, %v590_v10 }
 0x7d2   :  { %842 = vpow2.f32 %v780_v13 }
 0x7d5   :  { %v591_v11 = vpop.f32.mrf.mxu3 }
 0x7d6   :  { %v841_v12 = vpop.eup %840 }
 0x7d7   :  { %621 = vrot.lane.b32.xlu1 %v841_v12, %s1055_s23 }
 0x7d8   :  { %v843_v14 = vpop.eup %842 }
 0x7d9   :  { %v596_v16 = vadd.f32 1.0, %v843_v14 }
 0x7db   :  { %844 = vrcp.f32 %v596_v16  ;;  %v608_v22 = vand.u32 2147483648, %v596_v16  ;;  %vm602_vm15 = vweird.f32 %v596_v16  ;;  %v606_v23 = vand.u32 2147483647, %v596_v16 }
 0x7dd   :  { %v609_v24 = vor.u32 1.1754944e-38, %v608_v22  ;;  %vm607_vm3 = vcmp.eq.f32.partialorder %v606_v23, 8.507059e+37 }
 0x7df   :  { %649 = vrot.lane.b32.xlu1 %v1149_v40, %s1061_s3 }
 0x7e1   :  { %v845_v17 = vpop.eup %844 }
 0x7e2   :  { %v598_v18 = vmul.f32 %v845_v17, %v596_v16  ;;  %vm603_vm14 = vweird.f32 %v845_v17 }
 0x7e3   :  { %vm604_vm2 = vmor %vm602_vm15, %vm603_vm14 }
 0x7e4   :  { %v599_v19 = vsub.f32 1.0, %v598_v18 }
 0x7e6   :  { %v600_v20 = vmul.f32 %v845_v17, %v599_v19 }
 0x7e7   :  { %637 = vrot.lane.b32.xlu1 %v1154_v49, %s1052_s15 }
 0x7e8   :  { %v601_v21 = vadd.f32 %v845_v17, %v600_v20 }
 0x7ea   :  { %v605_v40 = vsel %vm604_vm2, %v845_v17, %v601_v21 }
 0x7eb   :  { %v610_v25 = vsel %vm607_vm3, %v609_v24, %v605_v40 }
 0x7ec   :  { %v619_v28 = vmul.f32 %v617_v27, %v610_v25 }
 0x7ef   :  { %645 = vrot.lane.b32.xlu1 %v555_v2, %s1061_s3 }
 0x849   :  { %v622_v49 = vpop.permute.xlu1 %621 }
 0x84a   :  { %v624_v26 = vmul.f32 %v622_v49, %v610_v25 }
 0x84c   :  { %626 = vrot.lane.b32.xlu0 %v624_v26, %s1052_s15  ;;  %s679_s15 = sshll.u32 %s1062_s7, 4  ;;  %s680_s15 = int_to_ptr.vmem [resolvable:$true] %s679_s15 }
 0x851   :  { %v650_v32 = vpop.permute.xlu1 %649 }
 0x852   :  { %v664_v36 = vsel %vm158_vm0, %v650_v32, %v1166_v15 }
 0x853   :  { %v665_v42 = vsel %vm338_vm1, %v664_v36, %v654_v34 }
 0x859   :  { %v638_v33 = vpop.permute.xlu1 %637 }
 0x85a   :  { %v660_v43 = vsel %vm158_vm0, %v638_v33, %v642_v39 }
 0x861   :  { %v646_v37 = vpop.permute.xlu1 %645 }
 0x862   :  { %v661_v45 = vsel %vm338_vm1, %v660_v43, %v646_v37 }
 0x8be   :  { %v627_v29 = vpop.permute.xlu0 %626 }
 0x8bf   :  { %v629_v30 = vadd.f32 %v627_v29, %v619_v28 }
 0x8c1   :  { %846 = vtanh.f32 %v629_v30 }
 0x8c7   :  { %v847_v31 = vpop.eup %846 }
 0x8c8   :  { %632 = vrot.lane.b32.xlu0 %v847_v31, %s1055_s23 }
 0x8d0   :  { %657 = vrot.lane.b32.xlu0 %v629_v30, %s1055_s23  ;;  %s681_s23 = sshll.u32 %s1212_s8, 4  ;;  %s682_s23 = int_to_ptr.hbm [resolvable:$true] %s681_s23 }
 0x93a   :  { %v633_v35 = vpop.permute.xlu0 %632 }
 0x93b   :  { %v635_v38 = vmul.f32 %v633_v35, %v610_v25 }
 0x93d   :  { %v663_v46 = vsel %vm662_vm4, %v661_v45, %v635_v38 }
 0x942   :  { %v658_v41 = vpop.permute.xlu0 %657 }
 0x943   :  { %v666_v44 = vsel %vm662_vm4, %v665_v42, %v658_v41 }
 0x944   :  { %v669_v15 = vrot.slane %v666_v44, 6 }
 0x946   :  { %v671_v47 = vsel %vm670_vm5, %v663_v46, %v669_v15 }
 0x947   :  { %673 = vst [vmem:[#allocation14] sm:$0xf] %v671_v47 }
 0x948   :  { %684 = dma.vmem_to_hbm [thread:$0]  %s680_s15, 64, %s682_s23, [#allocation4]  }
 0x949   :  { %1048 = dma.done.wait [#allocation4], 64  }
 0x94a   :  { %1049 = vsyncadd [#allocation4], 4294967232 }
 0x94b   :  { %689 = vsyncpa [#allocation3], 1 }
 0x94c   :  { %690 = vsyncpa [#allocation6], 1 }
 0x94d   :  { %691 = vsyncpa [#allocation9], 1 }
 0x94e   :  { %692 = vsyncpa [#allocation12], 1 }
 0x94f   :  { %693 = vsyncpa [#allocation4], 1 }

</bundles_post_ra>
